<compile_context>
chip_gen: v5e
topology: v5e:2x2
jax: 0.10.0
libtpu: 0.0.40
codegen_flags: <defaults>
</compile_context>

<pallas_src>
import numpy as np
import jax
import jax.numpy as jnp
from jax.experimental import pallas as pl
from jax.experimental.pallas import tpu as pltpu


def _upsample_matrix(in_size: int, out_size: int) -> np.ndarray:
    """1-D interpolation matrix matching nn.Upsample(scale=2, bilinear, align_corners=False)."""
    u = np.zeros((out_size, in_size), np.float32)
    scale = in_size / out_size
    for o in range(out_size):
        src = (o + 0.5) * scale - 0.5
        src = max(src, 0.0)
        i0 = min(int(np.floor(src)), in_size - 1)
        i1 = min(i0 + 1, in_size - 1)
        lam = src - i0
        u[o, i0] += 1.0 - lam
        u[o, i1] += lam
    return u


def _pick_bt(B: int, Cout: int, K9: int, RR: int, HW: int) -> int:
    """Batches packed per grid step.

    Big enough to amortize the per-step grid overhead, but: keep >= 2 grid
    steps so the 'parallel' axis can shard across v7x's two TensorCores, keep
    Bt*Cout near the MXU M width (bounds the block-diagonal flop waste), and
    keep the double-buffered per-step blocks well below the default scoped
    VMEM limit on every generation.
    """
    if B <= 1:
        return 1
    per_batch_bytes = K9 * RR * 2 + Cout * RR * 4 + Cout * HW * 4
    vmem_cap = max(1, (6 << 20) // (2 * per_batch_bytes))
    mxu_cap = max(1, 256 // max(Cout, 1))
    bt = max(1, min(B // 2, vmem_cap, mxu_cap))
    while bt > 1 and B % bt != 0:
        bt -= 1
    return bt


def _gau_kernel(patches_ref, high_ref, w3_ref, b3_ref, w1_ref, b1_ref, kt_ref,
                out_ref):
    # patches_ref : (1, Bt*9Cin, R*R)   bf16  im2col, rows = (bt, tap*Cin + cin)
    # high_ref    : (1, Bt*Cout, Hh*Wh) f32   rows = (bt, cout), lanes = spatial
    # w3_ref      : (Bt*Cout, Bt*9Cin)  bf16  kron(I_Bt, W3)  (block-diagonal)
    # b3_ref      : (Bt*Cout, 1)        f32   b3 tiled per packed batch
    # w1_ref      : (Bt*Cout, Bt*Cout)  f32   kron(I_Bt, W1)
    # b1_ref      : (Bt*Cout, 1)        f32
    # kt_ref      : (Hh*Wh, R*R)        f32   kron(U, U)^T  (bilinear 2x upsample)
    # out_ref     : (1, Bt*Cout, R*R)   f32
    patches = patches_ref[0]
    high = high_ref[0]
    inv_hw = 1.0 / high.shape[1]

    # conv3x3: ONE block-diagonal im2col matmul on the MXU (f32 accumulation).
    conv3 = jnp.dot(w3_ref[...], patches,
                    preferred_element_type=jnp.float32) + b3_ref[...]     # (Bt*Cout, RR)

    # AvgPool2d(R/2) over an R/2 x R/2 map == global mean, then conv1x1.
    gp = jnp.sum(high, axis=1, keepdims=True) * inv_hw                    # (Bt*Cout, 1)
    g = jnp.dot(w1_ref[...], gp,
                preferred_element_type=jnp.float32) + b1_ref[...]         # (Bt*Cout, 1)

    # bilinear 2x upsample (align_corners=False) == ONE matmul with kron(U,U)^T.
    up = jnp.dot(high, kt_ref[...], preferred_element_type=jnp.float32)   # (Bt*Cout, RR)

    out_ref[0] = (conv3 * g + up).astype(out_ref.dtype)


def gau_forward(low_nchw, high_nchw, w3_oihw, b3, w1_oihw, b1):
    B, Cin, R, _ = low_nchw.shape
    Cout = w3_oihw.shape[0]
    Hh, Wh = high_nchw.shape[2], high_nchw.shape[3]
    assert Hh == Wh and 2 * Hh == R, "GAU expects high = R/2 x R/2 and low = R x R"
    HW = Hh * Wh
    RR = R * R
    K9 = 9 * Cin
    # kron(U, U)^T is (HW, RR) f32 ~ R^4 bytes: fine up to R ~ 48.
    # TODO(synk): for large R switch the upsample back to a separable two-matmul
    # form so the kron operand does not blow v7x's 64 MiB VMEM.

    Bt = _pick_bt(B, Cout, K9, RR, HW)
    nb = B // Bt

    # ---------------- XLA-side glue (layout only) ----------------
    # im2col of the zero-padded low features, Bt batches grouped per grid step:
    # rows = (bt, tap*Cin + cin), lanes = flattened output pixel.
    lowp = jnp.pad(low_nchw, ((0, 0), (0, 0), (1, 1), (1, 1)))
    taps = [lowp[:, :, dy:dy + R, dx:dx + R] for dy in range(3) for dx in range(3)]
    patches = jnp.stack(taps, axis=1).reshape(nb, Bt * K9, RR).astype(jnp.bfloat16)

    # high with rows = (bt, cout), lanes = flattened spatial (free reshape).
    high3 = high_nchw.reshape(nb, Bt * Cout, HW)

    # Block-diagonal (over the Bt packed batches) weights -> one matmul per path.
    w3c = jnp.transpose(w3_oihw, (0, 2, 3, 1)).reshape(Cout, K9)   # matches im2col K order
    eye_bt = jnp.eye(Bt, dtype=jnp.float32)
    w3bd = jnp.kron(eye_bt, w3c).astype(jnp.bfloat16)              # (Bt*Cout, Bt*K9)
    w1bd = jnp.kron(eye_bt, w1_oihw[:, :, 0, 0])                   # (Bt*Cout, Bt*Cout)
    b3t = jnp.tile(b3.reshape(Cout, 1), (Bt, 1))                   # (Bt*Cout, 1)
    b1t = jnp.tile(b1.reshape(Cout, 1), (Bt, 1))

    # Bilinear 2x upsample as a single matrix: kron(U, U)^T, VMEM-resident.
    u_np = _upsample_matrix(Hh, R)                                 # (R, Hh)
    kron_t = jnp.asarray(np.kron(u_np, u_np).T, jnp.float32)       # (HW, RR)

    flops = int(2 * B * Cout * K9 * RR + 2 * B * Cout * HW * RR
                + 2 * B * Cout * Cout + 3 * B * Cout * RR)
    bytes_accessed = int(B * K9 * RR * 2 + B * Cout * HW * 4 + B * Cout * RR * 4
                         + (Bt * Cout) * (Bt * K9) * 2
                         + (Bt * Cout) * (Bt * Cout) * 4
                         + HW * RR * 4 + 2 * Bt * Cout * 4)

    out3 = pl.pallas_call(
        _gau_kernel,
        out_shape=jax.ShapeDtypeStruct((nb, Bt * Cout, RR), jnp.float32),
        grid=(nb,),
        in_specs=[
            pl.BlockSpec((1, Bt * K9, RR), lambda b: (b, 0, 0)),
            pl.BlockSpec((1, Bt * Cout, HW), lambda b: (b, 0, 0)),
            pl.BlockSpec((Bt * Cout, Bt * K9), lambda b: (0, 0)),
            pl.BlockSpec((Bt * Cout, 1), lambda b: (0, 0)),
            pl.BlockSpec((Bt * Cout, Bt * Cout), lambda b: (0, 0)),
            pl.BlockSpec((Bt * Cout, 1), lambda b: (0, 0)),
            pl.BlockSpec((HW, RR), lambda b: (0, 0)),
        ],
        out_specs=pl.BlockSpec((1, Bt * Cout, RR), lambda b: (b, 0, 0)),
        compiler_params=pltpu.CompilerParams(dimension_semantics=("parallel",)),
        cost_estimate=pl.CostEstimate(flops=flops, transcendentals=0,
                                      bytes_accessed=bytes_accessed),
    )(patches, high3, w3bd, b3t, w1bd, b1t, kron_t)

    # Rows are already (b, c)-ordered and lanes are (y, x): only free reshapes left.
    return out3.reshape(B, Cout, R, R)


def _gau_reference(low, high, w3, b3, w1, b1):
    """Pure-JAX reference (NCHW), mirrors the PyTorch forward exactly."""
    hp = jax.lax.Precision.HIGHEST
    conv3 = jax.lax.conv_general_dilated(
        low, w3, window_strides=(1, 1), padding=((1, 1), (1, 1)),
        dimension_numbers=('NCHW', 'OIHW', 'NCHW'),
        precision=hp) + b3[None, :, None, None]
    gp = jnp.mean(high, axis=(2, 3), keepdims=True)
    g = jax.lax.conv_general_dilated(
        gp, w1, window_strides=(1, 1), padding='VALID',
        dimension_numbers=('NCHW', 'OIHW', 'NCHW'),
        precision=hp) + b1[None, :, None, None]
    mul = conv3 * g
    R = low.shape[2]
    u = jnp.asarray(_upsample_matrix(high.shape[2], R))
    t = jnp.einsum('oh,bchw->bcow', u, high, precision=hp)
    up = jnp.einsum('pw,bcow->bcop', u, t, precision=hp)
    return mul + up


if __name__ == "__main__":
    # dim_in=4, dim_out=8, resolution_in=16  ->  low 16x16, high 8x8
    B, Cin, Cout, R = 2, 4, 8, 16

    key = jax.random.PRNGKey(0)
    k = jax.random.split(key, 6)
    low = jax.random.normal(k[0], (B, Cin, R, R), jnp.float32)
    high = jax.random.normal(k[1], (B, Cout, R // 2, R // 2), jnp.float32)
    w3 = jax.random.normal(k[2], (Cout, Cin, 3, 3), jnp.float32) * 0.1
    b3 = jax.random.normal(k[3], (Cout,), jnp.float32) * 0.1
    w1 = jax.random.normal(k[4], (Cout, Cout, 1, 1), jnp.float32) * 0.1
    b1 = jax.random.normal(k[5], (Cout,), jnp.float32) * 0.1

    out = gau_forward(low, high, w3, b3, w1, b1)
    out = jax.block_until_ready(out)

    ref = _gau_reference(low, high, w3, b3, w1, b1)
    np.testing.assert_allclose(np.asarray(out), np.asarray(ref), rtol=1e-3, atol=2e-3)

    print("KERNEL_OK")
</pallas_src>

<mosaic_0001>
module attributes {stable_mosaic.version = 11 : i64} {
  func.func @_gau_kernel(%arg0: i32, %arg1: memref<1x36x256xbf16, #tpu.memory_space<vmem>>, %arg2: memref<1x8x64xf32, #tpu.memory_space<vmem>>, %arg3: memref<8x36xbf16, #tpu.memory_space<vmem>>, %arg4: memref<8x1xf32, #tpu.memory_space<vmem>>, %arg5: memref<8x8xf32, #tpu.memory_space<vmem>>, %arg6: memref<8x1xf32, #tpu.memory_space<vmem>>, %arg7: memref<64x256xf32, #tpu.memory_space<vmem>>, %arg8: memref<1x8x256xf32, #tpu.memory_space<vmem>>) attributes {dimension_semantics = [#tpu.dimension_semantics<parallel>], iteration_bounds = array<i64: 2>, scalar_prefetch = 0 : i64, scratch_operands = 0 : i64, tpu.core_type = #tpu.core_type<tc>, window_params = [{transform_indices = @transform_0, window_bounds = array<i64: 1, 36, 256>}, {transform_indices = @transform_1, window_bounds = array<i64: 1, 8, 64>}, {pipeline_mode = #tpu.pipeline_mode<synchronous>, transform_indices = @transform_2, window_bounds = array<i64: 8, 36>}, {pipeline_mode = #tpu.pipeline_mode<synchronous>, transform_indices = @transform_3, window_bounds = array<i64: 8, 1>}, {pipeline_mode = #tpu.pipeline_mode<synchronous>, transform_indices = @transform_4, window_bounds = array<i64: 8, 8>}, {pipeline_mode = #tpu.pipeline_mode<synchronous>, transform_indices = @transform_5, window_bounds = array<i64: 8, 1>}, {pipeline_mode = #tpu.pipeline_mode<synchronous>, transform_indices = @transform_6, window_bounds = array<i64: 64, 256>}, {transform_indices = @transform_7, window_bounds = array<i64: 1, 8, 256>}]} {
    %c0 = arith.constant 0 : index
    %c0_0 = arith.constant 0 : index
    %c0_1 = arith.constant 0 : index
    %0 = vector.load %arg1[%c0, %c0_0, %c0_1] : memref<1x36x256xbf16, #tpu.memory_space<vmem>>, vector<1x36x256xbf16>
    %1 = vector.shape_cast %0 : vector<1x36x256xbf16> to vector<36x256xbf16>
    %c0_2 = arith.constant 0 : index
    %c0_3 = arith.constant 0 : index
    %c0_4 = arith.constant 0 : index
    %2 = vector.load %arg2[%c0_2, %c0_3, %c0_4] : memref<1x8x64xf32, #tpu.memory_space<vmem>>, vector<1x8x64xf32>
    %3 = vector.shape_cast %2 : vector<1x8x64xf32> to vector<8x64xf32>
    %c0_5 = arith.constant 0 : index
    %c0_6 = arith.constant 0 : index
    %4 = vector.load %arg3[%c0_5, %c0_6] : memref<8x36xbf16, #tpu.memory_space<vmem>>, vector<8x36xbf16>
    %cst = arith.constant dense<0.000000e+00> : vector<8x256xf32>
    %5 = tpu.matmul %4, %1, %cst {dimension_numbers = #tpu.dot_dimension_numbers<[1], [0], [0], [1], [0, 0, 1, 1], [], []>} : vector<8x36xbf16>, vector<36x256xbf16>, vector<8x256xf32> -> vector<8x256xf32>
    %c0_7 = arith.constant 0 : index
    %c0_8 = arith.constant 0 : index
    %6 = vector.load %arg4[%c0_7, %c0_8] : memref<8x1xf32, #tpu.memory_space<vmem>>, vector<8x1xf32>
    %7 = vector.broadcast %6 : vector<8x1xf32> to vector<8x256xf32>
    %8 = arith.addf %5, %7 : vector<8x256xf32>
    %cst_9 = arith.constant dense<0.000000e+00> : vector<8xf32>
    %9 = vector.multi_reduction <add>, %3, %cst_9 [1] : vector<8x64xf32> to vector<8xf32>
    %10 = vector.shape_cast %9 : vector<8xf32> to vector<8x1xf32>
    %cst_10 = arith.constant 1.562500e-02 : f32
    %11 = vector.broadcast %cst_10 : f32 to vector<8x1xf32>
    %12 = arith.mulf %10, %11 : vector<8x1xf32>
    %c0_11 = arith.constant 0 : index
    %c0_12 = arith.constant 0 : index
    %13 = vector.load %arg5[%c0_11, %c0_12] : memref<8x8xf32, #tpu.memory_space<vmem>>, vector<8x8xf32>
    %cst_13 = arith.constant dense<0.000000e+00> : vector<8x1xf32>
    %14 = tpu.matmul %13, %12, %cst_13 {dimension_numbers = #tpu.dot_dimension_numbers<[1], [0], [0], [1], [0, 0, 1, 1], [], []>} : vector<8x8xf32>, vector<8x1xf32>, vector<8x1xf32> -> vector<8x1xf32>
    %c0_14 = arith.constant 0 : index
    %c0_15 = arith.constant 0 : index
    %15 = vector.load %arg6[%c0_14, %c0_15] : memref<8x1xf32, #tpu.memory_space<vmem>>, vector<8x1xf32>
    %16 = arith.addf %14, %15 : vector<8x1xf32>
    %c0_16 = arith.constant 0 : index
    %c0_17 = arith.constant 0 : index
    %17 = vector.load %arg7[%c0_16, %c0_17] : memref<64x256xf32, #tpu.memory_space<vmem>>, vector<64x256xf32>
    %cst_18 = arith.constant dense<0.000000e+00> : vector<8x256xf32>
    %18 = tpu.matmul %3, %17, %cst_18 {dimension_numbers = #tpu.dot_dimension_numbers<[1], [0], [0], [1], [0, 0, 1, 1], [], []>} : vector<8x64xf32>, vector<64x256xf32>, vector<8x256xf32> -> vector<8x256xf32>
    %19 = vector.broadcast %16 : vector<8x1xf32> to vector<8x256xf32>
    %20 = arith.mulf %8, %19 : vector<8x256xf32>
    %21 = arith.addf %20, %18 : vector<8x256xf32>
    %c0_19 = arith.constant 0 : index
    %c0_20 = arith.constant 0 : index
    %c0_21 = arith.constant 0 : index
    %22 = vector.load %arg8[%c0_19, %c0_20, %c0_21] : memref<1x8x256xf32, #tpu.memory_space<vmem>>, vector<1x8x256xf32>
    %23 = vector.shape_cast %22 : vector<1x8x256xf32> to vector<8x256xf32>
    %24 = vector.shape_cast %21 : vector<8x256xf32> to vector<1x8x256xf32>
    tpu.vector_store %arg8[%c0_19, %c0_20, %c0_21], %24 {strides = array<i32>} : memref<1x8x256xf32, #tpu.memory_space<vmem>>, vector<1x8x256xf32>,
    return
  }
  func.func @transform_0(%arg0: i32) -> (i32, i32, i32) {
    %c0_i32 = arith.constant 0 : i32
    %c0_i32_0 = arith.constant 0 : i32
    %c0_i32_1 = arith.constant 0 : i32
    return %arg0, %c0_i32, %c0_i32_0 : i32, i32, i32
  }
  func.func @transform_1(%arg0: i32) -> (i32, i32, i32) {
    %c0_i32 = arith.constant 0 : i32
    %c0_i32_0 = arith.constant 0 : i32
    %c0_i32_1 = arith.constant 0 : i32
    return %arg0, %c0_i32, %c0_i32_0 : i32, i32, i32
  }
  func.func @transform_2(%arg0: i32) -> (i32, i32) {
    %c0_i32 = arith.constant 0 : i32
    %c0_i32_0 = arith.constant 0 : i32
    %c0_i32_1 = arith.constant 0 : i32
    return %c0_i32, %c0_i32_0 : i32, i32
  }
  func.func @transform_3(%arg0: i32) -> (i32, i32) {
    %c0_i32 = arith.constant 0 : i32
    %c0_i32_0 = arith.constant 0 : i32
    %c0_i32_1 = arith.constant 0 : i32
    return %c0_i32, %c0_i32_0 : i32, i32
  }
  func.func @transform_4(%arg0: i32) -> (i32, i32) {
    %c0_i32 = arith.constant 0 : i32
    %c0_i32_0 = arith.constant 0 : i32
    %c0_i32_1 = arith.constant 0 : i32
    return %c0_i32, %c0_i32_0 : i32, i32
  }
  func.func @transform_5(%arg0: i32) -> (i32, i32) {
    %c0_i32 = arith.constant 0 : i32
    %c0_i32_0 = arith.constant 0 : i32
    %c0_i32_1 = arith.constant 0 : i32
    return %c0_i32, %c0_i32_0 : i32, i32
  }
  func.func @transform_6(%arg0: i32) -> (i32, i32) {
    %c0_i32 = arith.constant 0 : i32
    %c0_i32_0 = arith.constant 0 : i32
    %c0_i32_1 = arith.constant 0 : i32
    return %c0_i32, %c0_i32_0 : i32, i32
  }
  func.func @transform_7(%arg0: i32) -> (i32, i32, i32) {
    %c0_i32 = arith.constant 0 : i32
    %c0_i32_0 = arith.constant 0 : i32
    %c0_i32_1 = arith.constant 0 : i32
    return %arg0, %c0_i32, %c0_i32_0 : i32, i32, i32
  }
}

</mosaic_0001>

<bundles_post_ra>
// kernel: tpu_custom_call.1
= control target key start
LH: loop header
LB: loop body
LE: loop exit
PB: predicated region body
PF: predicated region fallthrough
CT: control target
= control target key end

     0   :  { %12 = vsyncpa [#allocation3], 0  ;;  %s901_s0 = inlined_call_operand.vmem [shape: bf16[2,36,256], index: 0, kind: input, shape index: {}]   ;;  %s902_s1 = inlined_call_operand.vmem [shape: f32[2,8,64], index: 1, kind: input, shape index: {}]   ;;  %s903_s2 = inlined_call_operand.vmem [shape: bf16[8,36], index: 2, kind: input, shape index: {}]   ;;  %s904_s3 = inlined_call_operand.vmem [shape: f32[8,1], index: 3, kind: input, shape index: {}]   ;;  %s905_s4 = inlined_call_operand.vmem [shape: f32[8,8], index: 4, kind: input, shape index: {}]   ;;  %s906_s5 = inlined_call_operand.vmem [shape: f32[8,1], index: 5, kind: input, shape index: {}]   ;;  %s907_s6 = inlined_call_operand.vmem [shape: f32[64,256], index: 6, kind: input, shape index: {}]   ;;  %s908_s7 = inlined_call_operand.hbm [shape: f32[2,8,256], index: 7, kind: output, shape index: {}]  }
   0x1   :  { %14 = vsyncpa [#allocation3 + $0x1], 0  ;;  %s745_s24 = smov 0   ;;  %s747_s25 = smov 0  }
   0x2   :  { %s749_s26 = smov 0   ;;  %s751_s27 = smov 0  }
   0x3 LB: > { %s766_s28 = sadd.s32 4294967295, %s702_s27   ;;  %s559_s29 = sadd.s32 4294967294, %s702_s27   ;;  %s702_s27 = sphi %s751_s27, %s914_s27   ;;  %s698_s26 = sphi %s749_s26, %s913_s26   ;;  %s694_s25 = sphi %s747_s25, %s912_s25   ;;  %s690_s24 = sphi %s745_s24, %s911_s24  }
   0x4   : > { %s770_s30 = sadd.s32 1, %s702_s27   ;;  %s184_s8 = sadd.s32 1, %s698_s26 }
   0x5   : > { %s181_s9 = ssub.s32 %s702_s27, %s770_s30  ;;  %p194_p0 = scmp.ne.s32.totalorder %s698_s26, %s694_s25 }
   0x6   : > { %p182_p1 = scmp.eq.s32.totalorder %s181_s9, 0  ;;  %p195_p2 = scmp.eq.s32.totalorder %s766_s28, 1 }
   0x7   : > { %p200_p3 = scmp.ne.s32.totalorder %s694_s25, %s690_s24  ;;  %p201_p4 = scmp.eq.s32.totalorder %s559_s29, 1 }
   0x8   : > { %s781_s10 = scalar_select %p182_p1, %s698_s26, %s184_s8  }
   0x9   : > { %p783_p5 = por %p195_p2, %p194_p0  ;;  %p787_p6 = por %p201_p4, %p200_p3 }
   0xa   : > { %p562_p7 = scmp.ge.s32.totalorder %s702_s27, 1  ;;  %p249_p8 = scmp.lt.s32.totalorder %s702_s27, 3 }
   0xc   : > { %p250_p9 = pnand %p562_p7, %p249_p8 }
   0xd   : > { %p285_p10 = scmp.lt.s32.totalorder (!%p250_p9), %s766_s28, 1  ;;  %s282_s20 = sand.u32 (!%p250_p9), 1, %s694_s25  }
   0xe   : > { %253 = sbr.rel (%p250_p9) target bundleno = 401 (0x191), region = 48  ;;  %s563_s22 = sshll.u32 (!%p250_p9), %s282_s20, 4 }
   0xf   : > { %s284_s9 = scalar_lea.vmem (!%p250_p9), [#allocation2], %s563_s22  ;;  %s660_s19 = scalar_lea.hbm (!%p250_p9), %s908_s7, 32 }
  0x13   : > { %s286_s13 = scalar_select %p285_p10, %s766_s28, 1  ;;  %vm370_vm0 = vcmask 523264   ;;  %v415_v3 = vld [vmem:[%s907_s6 + $0x70] sm:$0xff]  ;;  %vm337_vm1 = vcmask 1041408   ;;  %v413_v8 = vld [vmem:[%s907_s6 + $0x60] sm:$0xff]  ;;  %vm333_vm2 = vcmask 293888  }
  0x14   : > { %428 = vmatpush.msra.mxu3 %v415_v3  ;;  %v411_v13 = vld [vmem:[%s907_s6 + $0x50] sm:$0xff]  ;;  %v409_v20 = vld [vmem:[%s907_s6 + $0x40] sm:$0xff]  ;;  %v704_v30 = vmov 0   ;;  %vm377_vm3 = vcmask 64512   ;;  %v416_v34 = vld [vmem:[%s907_s6 + $0x78] sm:$0xff] }
  0x15   : > { %s565_s14 = sshll.u32 %s286_s13, 3  ;;  %s597_s18 = smul.u32 40, %s286_s13  ;;  %v407_v23 = vld [vmem:[%s907_s6 + $0x30] sm:$0xff]  ;;  %v405_v24 = vld [vmem:[%s907_s6 + $0x20] sm:$0xff]  ;;  %638 = vset.pattern.permute.xlu0 %v704_v30  ;;  %639 = vset.pattern.permute.xlu1 %v704_v30  ;;  %v414_v35 = vld [vmem:[%s907_s6 + $0x68] sm:$0xff] }
  0x16   : > { %s293_s17 = scalar_lea.vmem %s902_s1, %s565_s14  ;;  %429 = vmatpush.msra.mxu3 %v413_v8  ;;  %v403_v27 = vld [vmem:[%s907_s6 + $0x10] sm:$0xff]  ;;  %v401_v28 = vld [vmem:[%s907_s6] sm:$0xff]  ;;  %v412_v36 = vld [vmem:[%s907_s6 + $0x58] sm:$0xff]  ;;  %s485_s13 = sshll.u32 %s284_s9, 4  ;;  %s486_s13 = int_to_ptr.vmem [resolvable:$true] %s485_s13 }
  0x17   : > { %v798_v0 = vld [vmem:[%s293_s17] sm:$0xff]  ;;  %s289_s21 = scalar_lea.vmem %s901_s0, %s597_s18  ;;  %v410_v37 = vld [vmem:[%s907_s6 + $0x48] sm:$0xff]  ;;  %v408_v38 = vld [vmem:[%s907_s6 + $0x38] sm:$0xff] }
  0x18   : > { %v371_v1 = vsel %vm370_vm0, %v798_v0, 0.0  ;;  %v299_v2 = vld [vmem:[%s289_s21 + $0x20] sm:$0x33]  ;;  %v576_v6 = vld [vmem:[%s289_s21 + $0x10] sm:$0xf]  ;;  %430 = vmatpush.msra.mxu3 %v411_v13  ;;  %v406_v39 = vld [vmem:[%s907_s6 + $0x28] sm:$0xff] }
  0x19   : > { %372 = vadd.xlane.f32.xlu0 %v371_v1  ;;  %v321_v4 = vunpack.c.l.b16 %v299_v2  ;;  %v322_v5 = vunpack.c.h.b16 %v299_v2  ;;  %v595_v7 = vld [vmem:[%s289_s21 + $0x14] sm:$0xf0]  ;;  %v594_v11 = vld [vmem:[%s289_s21 + $0x14] sm:$0xf]  ;;  %v578_v12 = vld [vmem:[%s289_s21 + $0x18] sm:$0xf0] }
  0x1a   : > { %v577_v16 = vor.u32 %v595_v7, %v576_v6  ;;  %v581_v17 = vor.u32 %v594_v11, %v578_v12  ;;  %v568_v18 = vld [vmem:[%s289_s21] sm:$0xf]  ;;  %v593_v19 = vld [vmem:[%s289_s21 + $0x4] sm:$0xf0]  ;;  %v592_v21 = vld [vmem:[%s289_s21 + $0x4] sm:$0xf]  ;;  %431 = vmatpush.msra.mxu3 %v409_v20 }
  0x1b   : > { %v327_v9 = vpack.c.b16 %v321_v4, %v321_v4  ;;  %v328_v10 = vpack.c.b16 %v322_v5, %v322_v5  ;;  %v570_v22 = vld [vmem:[%s289_s21 + $0x8] sm:$0xf0]  ;;  %v569_v25 = vor.u32 %v593_v19, %v568_v18  ;;  %v301_v29 = vld [vmem:[%s903_s2] sm:$0xf]  ;;  %v404_v40 = vld [vmem:[%s907_s6 + $0x18] sm:$0xff]  ;;  %s596_s21 = sshll.u32 %s766_s28, 4 }
  0x1c   : > { %432 = vmatpush.msra.mxu3 %v407_v23  ;;  %v573_v26 = vor.u32 %v592_v21, %v570_v22  ;;  %v375_v33 = vld [vmem:[%s905_s4] sm:$0xff]  ;;  %v402_v41 = vld [vmem:[%s907_s6 + $0x8] sm:$0xff]  ;;  %s483_s8 = scalar_lea.hbm %s908_s7, %s596_s21  ;;  %s472_s28 = scalar_lea.sflag [#allocation3], %s282_s20 }
  0x1d   : > { %v339_v14 = vsel %vm337_vm1, %v327_v9, 0  ;;  %v342_v15 = vsel %vm337_vm1, %v328_v10, 0  ;;  %v302_v42 = vld [vmem:[%s904_s3] sm:$0xff]  ;;  %s487_s14 = sshll.u32 %s483_s8, 4  ;;  %s488_s14 = int_to_ptr.hbm [resolvable:$true] %s487_s14 }
  0x1e   : > { %349 = vmatpush.bf16.msra.mxu0 %v339_v14  ;;  %362 = vmatpush.bf16.msra.mxu1 %v342_v15  ;;  %v376_v47 = vld [vmem:[%s906_s5] sm:$0xff]  ;;  %s654_s15 = sshra.s32 %s488_s14, 4  ;;  %s655_s15 = int_to_ptr.hbm [resolvable:$true] %s654_s15 }
  0x1f   : > { %433 = vmatpush.msra.mxu3 %v405_v24  ;;  %s656_s16 = scalar_lea.hbm %s655_s15, 16  ;;  %p661_p0 = scmp.lt.s32.totalorder %s655_s15, %s908_s7 }
  0x20   : > { %p657_p11 = scmp.ne.s32.totalorder %s655_s15, %s656_s16  ;;  %p662_p1 = scmp.lt.s32.totalorder %s660_s19, %s656_s16 }
  0x21   : > { %434 = vmatpush.msra.mxu3 %v403_v27 }
  0x22   : > { %350 = vmatpush.bf16.msra.mxu0 %v577_v16  ;;  %363 = vmatpush.bf16.msra.mxu1 %v581_v17  ;;  %p658_p12 = pnand %p657_p11, %p783_p5  ;;  %p663_p2 = por %p662_p1, %p661_p0 }
  0x23   : > { %435 = vmatpush.msra.mxu3 %v401_v28 }
  0x24   : > { %585 = vmatmul.msk.f32.vlgmr.msra.gmra.mxu3 %vm370_vm0, %v798_v0  ;;  %p659_p13 = pneg %p658_p12 }
  0x26   : > { %351 = vmatpush.bf16.msra.mxu0 %v569_v25  ;;  %364 = vmatpush.bf16.msra.mxu1 %v573_v26  ;;  %p664_p3 = pnand %p663_p2, %p659_p13 }
  0x29   : > { %582 = vmatmul.msk.bf16.vlgmr.msra.gmra.mxu0 %vm333_vm2, %v301_v29  ;;  %583 = vmatmul.msk.bf16.vlgmr.msra.gmra.mxu1 %vm333_vm2, %v301_v29 }
  0x2d   : > { %305 = vperm.xlu0 %638, %v302_v42  }
  0x8c   : > { %v373_v31 = vpop.xlane.xlu0 %372 }
  0x8d   : > { %v374_v32 = vmul.f32 0.015625, %v373_v31 }
  0x8f   : > { %396 = vmatpush.msra.mxu2 %v374_v32 }
  0x90   : > { %584 = vmatmul.msk.f32.vlgmr.msra.gmra.mxu2 %vm377_vm3, %v375_v33 }
  0x91   : > { %448 = vmatpush.msrb.mxu2 %v416_v34 }
  0x93   : > { %449 = vmatpush.msrb.mxu2 %v414_v35 }
  0x95   : > { %450 = vmatpush.msrb.mxu2 %v412_v36 }
  0x97   : > { %451 = vmatpush.msrb.mxu2 %v410_v37 }
  0x99   : > { %452 = vmatpush.msrb.mxu2 %v408_v38 }
  0x9b   : > { %453 = vmatpush.msrb.mxu2 %v406_v39 }
  0x9d   : > { %454 = vmatpush.msrb.mxu2 %v404_v40 }
  0x9f   : > { %455 = vmatpush.msrb.mxu2 %v402_v41  ;;  %v306_v50 = vpop.permute.xlu0 %305 }
  0xa0   : > { %586 = vmatmul.msk.f32.vlgmr.msrb.gmra.mxu2 %vm370_vm0, %v798_v0 }
  0xa6   : > { %v353_v43 = vpop.f32.mrf.mxu0  ;;  %v366_v44 = vpop.f32.mrf.mxu1 }
  0xa7   : > { %v354_v51 = vadd.f32 %v353_v43, %v306_v50  ;;  %v367_v52 = vadd.f32 %v366_v44, %v306_v50  ;;  %v437_v53 = vpop.f32.mrf.mxu3 }
  0xae   : > { %v355_v45 = vpop.f32.mrf.mxu0  ;;  %v368_v46 = vpop.f32.mrf.mxu1 }
 0x113   : > { %v398_v48 = vpop.f32.mrf.mxu2 }
 0x114   : > { %v399_v49 = vadd.f32 %v398_v48, %v376_v47 }
 0x116   : > { %462 = vperm.xlu1 %639, %v399_v49  }
 0x123   : > { %v457_v55 = vpop.f32.mrf.mxu2 }
 0x188   : > { %v463_v54 = vpop.permute.xlu1 %462 }
 0x189   : > { %v465_v56 = vmul.f32 %v463_v54, %v354_v51  ;;  %v466_v57 = vmul.f32 %v463_v54, %v367_v52 }
 0x18b   : > { %v467_v58 = vadd.f32 %v465_v56, %v437_v53  ;;  %v468_v59 = vadd.f32 %v466_v57, %v457_v55 }
 0x18d   : > { %469 = vst [vmem:[%s284_s9] sm:$0xff] %v467_v58 }
 0x18e   : > { %470 = vst [vmem:[%s284_s9 + $0x8] sm:$0xff] %v468_v59 }
 0x18f   : > { %667 = shalt.err (!%p664_p3)
}
 0x190   : > { %598 = dma.vmem_to_hbm [thread:$0]  (%p783_p5), %s486_s13, 256, %s488_s14, %s472_s28  }
 0x191 PF: > { %p604_p4 = scmp.ge.s32.totalorder %s702_s27, 2  ;;  %s499_s20 = sand.u32 1, %s690_s24  }
 0x192   : > { %s500_s23 = scalar_lea.sflag [#allocation3], %s499_s20 }
 0x193   : > { %p601_p7 = pnand %p604_p4, %p787_p6 }
 0x195   : > { %p602_p8 = pneg %p601_p7 }
 0x197   : > { %685 = dma.done.wait (%p602_p8), %s500_s23, 256  }
 0x198   : > { %687 = vsyncadd (%p602_p8), %s500_s23, 4294967040  ;;  %p17_p9 = scmp.ge.s32.totalorder %s770_s30, 4   ;;  %s911_s24 = smov %s694_s25 }
 0x199   : > { %s912_s25 = smov %s698_s26  ;;  %s913_s26 = smov %s781_s10 }
 0x19a   : > { %s914_s27 = smov %s770_s30  ;;  %19 = sbr.rel (!%p17_p9) target bundleno = 3 (0x3), region = 86 }
 0x19f   :  { %506 = vsyncpa [#allocation3], 1 }
 0x1a0   :  { %508 = vsyncpa [#allocation3 + $0x1], 1 }

</bundles_post_ra>
